<compile_context>
chip_gen: v6e
topology: v6e:2x2x1
jax: 0.10.0
libtpu: 0.0.40
codegen_flags: <defaults>
</compile_context>

<pallas_src>
import functools

import jax
import jax.numpy as jnp
from jax.experimental import pallas as pl
from jax.experimental.pallas import tpu as pltpu

_LANE = 128
_SUBLANE = {4: 8, 2: 16, 1: 32}   # sublane pack per element size (f32/bf16/int8)
_MIB = 1024 * 1024


def _film_kernel(x_ref, g_ref, b_ref, o_ref):
    # x_ref: (row_tile, hw_tile); g_ref/b_ref: (row_tile, 1) f32 FiLM params.
    # FMA in f32 (VPU has huge slack in this HBM-bound kernel), cast on store.
    x = x_ref[...].astype(jnp.float32)
    o_ref[...] = (x * g_ref[...] + b_ref[...]).astype(o_ref.dtype)


@functools.lru_cache(maxsize=None)
def _tpu_config():
    """Returns (target_block_bytes, vmem_limit_bytes, multi_tensorcore)."""
    vmem_cap = 64 * _MIB                 # conservative default (v7x per-core)
    try:
        info = pltpu.get_tpu_info()
        vmem_cap = int(getattr(info, "vmem_capacity_bytes", vmem_cap))
    except Exception:
        pass
    kind = ""
    try:
        kind = jax.devices()[0].device_kind.lower()
    except Exception:
        pass
    # Leave headroom for Mosaic-internal scratch; never ask for more than
    # 64 MiB scoped VMEM (enough for 4 double-buffered ~8 MiB blocks + params
    # on every generation, including v7x's 64 MiB physical VMEM per TC).
    vmem_limit = int(min((vmem_cap * 3) // 4, 64 * _MIB))
    target_block = int(min(8 * _MIB, vmem_limit // 6))
    multi_tc = ("v7" in kind) or ("tpu7" in kind)
    return target_block, vmem_limit, multi_tc


def _pick_tiles(nc, hw, stream_itemsize, pack_itemsize, target_bytes):
    """Pick (row_tile, hw_tile) obeying the (sublane,128) rule, ~target_bytes."""
    sub = _SUBLANE.get(pack_itemsize, 8)

    # Lane (last) axis: full extent for small/ragged H*W (always legal), else
    # the widest multiple of 128 the budget allows.  Ragged tails are handled
    # by the pl.cdiv grid + Pallas block padding (stores are masked).
    if hw <= 4 * _LANE:
        hw_tile = hw
    else:
        min_rows = nc if nc < sub else sub
        lane_budget = max(_LANE, target_bytes // max(min_rows * stream_itemsize, 1))
        hw_tile = max(_LANE, (min(hw, lane_budget) // _LANE) * _LANE)

    # Sublane/grid (row) axis: dtype-aware sublane multiple, fill the budget.
    if nc < sub:
        row_tile = nc
    else:
        max_rows = max(sub, target_bytes // max(hw_tile * stream_itemsize, 1))
        row_cap = (nc // sub) * sub
        row_tile = max(sub, min(row_cap, (max_rows // sub) * sub))
    return row_tile, hw_tile


@jax.jit
def multi_rank_film(x_nchw: jax.Array, gamma: jax.Array, beta: jax.Array) -> jax.Array:
    """x_nchw: (N, C, H, W); gamma/beta: (rank, C). Returns (N, C, H, W)."""
    n, c, h, w = x_nchw.shape
    rank = gamma.shape[0]
    assert gamma.shape == (rank, c) and beta.shape == (rank, c)

    # PyTorch promotes (f32 params * x) -> keep the reference promotion.
    out_dtype = jnp.result_type(x_nchw.dtype, gamma.dtype, beta.dtype)

    # Hoist the (exact) rank reduction out of the kernel; stay in f32.
    g = jnp.mean(gamma.astype(jnp.float32), axis=0)     # (C,)
    b = jnp.mean(beta.astype(jnp.float32), axis=0)      # (C,)

    # NCHW -> (N*C, H*W): layout-preserving reshape, no HBM transpose.
    nc, hw = n * c, h * w
    x2d = x_nchw.reshape(nc, hw)
    # Per-row (row r -> channel r % C) scale/shift, (N*C, 1), f32.
    g_rows = jnp.tile(g, n).reshape(nc, 1)
    b_rows = jnp.tile(b, n).reshape(nc, 1)

    target_block, vmem_limit, multi_tc = _tpu_config()
    x_item = jnp.dtype(x_nchw.dtype).itemsize
    o_item = jnp.dtype(out_dtype).itemsize
    row_tile, hw_tile = _pick_tiles(nc, hw,
                                    stream_itemsize=max(x_item, o_item),
                                    pack_itemsize=min(x_item, o_item),
                                    target_bytes=target_block)
    grid = (pl.cdiv(nc, row_tile), pl.cdiv(hw, hw_tile))

    # Shard the leading (row) axis across both TensorCores on v7x; plain
    # "parallel" elsewhere (v5e/v6e have a single TC per chip).
    if multi_tc and grid[0] >= 2:
        dim_sem = (pltpu.CORE_PARALLEL, pltpu.PARALLEL)
    else:
        dim_sem = ("parallel", "parallel")

    out2d = pl.pallas_call(
        _film_kernel,
        out_shape=jax.ShapeDtypeStruct((nc, hw), out_dtype),
        grid_spec=pltpu.PrefetchScalarGridSpec(
            num_scalar_prefetch=0,
            grid=grid,
            in_specs=[
                pl.BlockSpec((row_tile, hw_tile), lambda i, j: (i, j)),  # x tile
                # Param block index is constant across the inner j axis, so
                # these tiny DMAs only fire when the row block changes.
                pl.BlockSpec((row_tile, 1), lambda i, j: (i, 0)),        # gamma rows
                pl.BlockSpec((row_tile, 1), lambda i, j: (i, 0)),        # beta rows
            ],
            out_specs=pl.BlockSpec((row_tile, hw_tile), lambda i, j: (i, j)),
        ),
        compiler_params=pltpu.CompilerParams(
            dimension_semantics=dim_sem,
            vmem_limit_bytes=vmem_limit,
        ),
    )(x2d, g_rows, b_rows)

    # (N*C, H*W) -> NCHW: free reshape.
    return out2d.reshape(n, c, h, w)


def multi_rank_film_ref(x, gamma, beta):
    # Pure-JAX reference mirroring the PyTorch forward literally.
    rank = gamma.shape[0]
    mods = [gamma[k][None, :, None, None] * x + beta[k][None, :, None, None]
            for k in range(rank)]
    return jnp.mean(jnp.stack(mods, axis=0), axis=0)


if __name__ == "__main__":
    N, C, H, W = 2, 4, 16, 16
    RANK = 4
    INIT_GAMMA, INIT_BETA = 1.0, 0.0

    key = jax.random.PRNGKey(0)
    kx, kg, kb = jax.random.split(key, 3)

    x = jax.random.normal(kx, (N, C, H, W), dtype=jnp.float32)

    # Module-default init plus a small deterministic perturbation so the
    # kernel path is exercised non-trivially.
    gamma = jnp.full((RANK, C), INIT_GAMMA, dtype=jnp.float32) \
        + 0.1 * jax.random.normal(kg, (RANK, C), dtype=jnp.float32)
    beta = jnp.full((RANK, C), INIT_BETA, dtype=jnp.float32) \
        + 0.1 * jax.random.normal(kb, (RANK, C), dtype=jnp.float32)

    out = jax.block_until_ready(multi_rank_film(x, gamma, beta))

    ref = multi_rank_film_ref(x, gamma, beta)
    assert out.shape == (N, C, H, W)
    assert out.dtype == ref.dtype
    assert jnp.allclose(out, ref, atol=1e-5, rtol=1e-5), "mismatch vs reference"

    print("KERNEL_OK")
</pallas_src>

<mosaic_0001>
module attributes {stable_mosaic.version = 11 : i64} {
  func.func @_film_kernel(%arg0: i32, %arg1: i32, %arg2: memref<8x256xf32, #tpu.memory_space<vmem>>, %arg3: memref<8x1xf32, #tpu.memory_space<vmem>>, %arg4: memref<8x1xf32, #tpu.memory_space<vmem>>, %arg5: memref<8x256xf32, #tpu.memory_space<vmem>>) attributes {dimension_semantics = [#tpu.dimension_semantics<parallel>, #tpu.dimension_semantics<parallel>], iteration_bounds = array<i64: 1, 1>, scalar_prefetch = 0 : i64, scratch_operands = 0 : i64, tpu.core_type = #tpu.core_type<tc>, window_params = [{transform_indices = @transform_0, window_bounds = array<i64: 8, 256>}, {transform_indices = @transform_1, window_bounds = array<i64: 8, 1>}, {transform_indices = @transform_2, window_bounds = array<i64: 8, 1>}, {transform_indices = @transform_3, window_bounds = array<i64: 8, 256>}]} {
    %c0 = arith.constant 0 : index
    %c0_0 = arith.constant 0 : index
    %0 = vector.load %arg2[%c0, %c0_0] : memref<8x256xf32, #tpu.memory_space<vmem>>, vector<8x256xf32>
    %c0_1 = arith.constant 0 : index
    %c0_2 = arith.constant 0 : index
    %1 = vector.load %arg3[%c0_1, %c0_2] : memref<8x1xf32, #tpu.memory_space<vmem>>, vector<8x1xf32>
    %2 = vector.broadcast %1 : vector<8x1xf32> to vector<8x256xf32>
    %3 = arith.mulf %0, %2 : vector<8x256xf32>
    %c0_3 = arith.constant 0 : index
    %c0_4 = arith.constant 0 : index
    %4 = vector.load %arg4[%c0_3, %c0_4] : memref<8x1xf32, #tpu.memory_space<vmem>>, vector<8x1xf32>
    %5 = vector.broadcast %4 : vector<8x1xf32> to vector<8x256xf32>
    %6 = arith.addf %3, %5 : vector<8x256xf32>
    %c0_5 = arith.constant 0 : index
    %c0_6 = arith.constant 0 : index
    %7 = vector.load %arg5[%c0_5, %c0_6] : memref<8x256xf32, #tpu.memory_space<vmem>>, vector<8x256xf32>
    tpu.vector_store %arg5[%c0_5, %c0_6], %6 {strides = array<i32>} : memref<8x256xf32, #tpu.memory_space<vmem>>, vector<8x256xf32>,
    return
  }
  func.func @transform_0(%arg0: i32, %arg1: i32) -> (i32, i32) {
    %c0_i32 = arith.constant 0 : i32
    return %arg0, %arg1 : i32, i32
  }
  func.func @transform_1(%arg0: i32, %arg1: i32) -> (i32, i32) {
    %c0_i32 = arith.constant 0 : i32
    %c0_i32_0 = arith.constant 0 : i32
    return %arg0, %c0_i32 : i32, i32
  }
  func.func @transform_2(%arg0: i32, %arg1: i32) -> (i32, i32) {
    %c0_i32 = arith.constant 0 : i32
    %c0_i32_0 = arith.constant 0 : i32
    return %arg0, %c0_i32 : i32, i32
  }
  func.func @transform_3(%arg0: i32, %arg1: i32) -> (i32, i32) {
    %c0_i32 = arith.constant 0 : i32
    return %arg0, %arg1 : i32, i32
  }
}

</mosaic_0001>

<bundles_post_ra>
// kernel: tile.13
= control target key start
LH: loop header
LB: loop body
LE: loop exit
PB: predicated region body
PF: predicated region fallthrough
CT: control target
= control target key end

     0   :  { %s22_s0 = inlined_call_operand.vmem [shape: f32[4], index: 0, kind: input, shape index: {}]   ;;  %s23_s1 = inlined_call_operand.vmem [shape: f32[2,4], index: 1, kind: output, shape index: {}]  }
   0x1   :  { %v4_v0 = vld [vmem:[%s22_s0] ss:$0 sm:$0xff] }
   0x2   :  { %5 = vst [vmem:[%s23_s1] sm:$0x3] %v4_v0 }

// kernel: tile.1
= control target key start
LH: loop header
LB: loop body
LE: loop exit
PB: predicated region body
PF: predicated region fallthrough
CT: control target
= control target key end

     0   :  { %s35_s8 = smov 125   ;;  %vm8_vm0 = vcmask 7168   ;;  %s36_s11 = smov 126   ;;  %s62_s0 = inlined_call_operand.vmem [shape: f32[2,4], index: 0, kind: input, shape index: {}]   ;;  %s63_s1 = inlined_call_operand.vmem [shape: f32[8,1], index: 1, kind: output, shape index: {}]  }
   0x1   :  { %v5_v0 = vld [vmem:[%s62_s0] sm:$0x3]  ;;  %s34_s0 = smov 127  }
   0x2   :  { %6 = vst [vmem:[#allocation0] sm:$0x3] %v5_v0 }
   0x9   :  { %v10_v1 = vld [vmem:[#allocation0] sm:$0x3]  }
   0xa   :  { %v22_v2 = vld [vmem:[#allocation0] sm:$0x3]   ;;  %11 = vrot.lane.b32.xlu0 %v10_v1, %s34_s0 }
   0xb   :  { %23 = vrot.lane.b32.xlu1 %v22_v2, %s35_s8  ;;  %v7_v3 = vld [vmem:[#allocation0] sm:$0x3]  }
   0xc   :  { %v16_v4 = vld [vmem:[#allocation0] sm:$0x3]   ;;  %9 = vst.msk [vmem:[%s63_s1] ss:$4 sm:$0x3] %vm8_vm0, %v7_v3  }
   0xe   :  { %17 = vrot.lane.b32.xlu0 %v16_v4, %s36_s11 }
  0x7c   :  { %v12_v5 = vpop.permute.xlu0 %11  }
  0x7d   :  { %v24_v6 = vpop.permute.xlu1 %23   ;;  %28 = vst.msk [vmem:[%s63_s1 + $0x1] ss:$4 sm:$0x3] %vm8_vm0, %v12_v5  }
  0x7e   :  { %30 = vst.msk [vmem:[%s63_s1 + $0x3] ss:$4 sm:$0x3] %vm8_vm0, %v24_v6  }
  0x80   :  { %v18_v7 = vpop.permute.xlu0 %17  }
  0x81   :  { %29 = vst.msk [vmem:[%s63_s1 + $0x2] ss:$4 sm:$0x3] %vm8_vm0, %v18_v7  }

// kernel: multi_rank_film.1
= control target key start
LH: loop header
LB: loop body
LE: loop exit
PB: predicated region body
PF: predicated region fallthrough
CT: control target
= control target key end

     0   :  { %v40_v0 = vmov 0   ;;  %s79_s1 = inlined_call_operand.vmem [shape: f32[8,1], index: 1, kind: input, shape index: {}]   ;;  %s80_s2 = inlined_call_operand.vmem [shape: f32[8,1], index: 2, kind: input, shape index: {}]   ;;  %s81_s0 = inlined_call_operand.vmem [shape: f32[8,256], index: 0, kind: input, shape index: {}]   ;;  %s82_s3 = inlined_call_operand.vmem [shape: f32[8,256], index: 3, kind: output, shape index: {}]  }
   0x1   :  { %39 = vset.pattern.permute.xlu0 %v40_v0  ;;  %v16_v1 = vld [vmem:[%s79_s1] sm:$0xff]  ;;  %v15_v5 = vld [vmem:[%s81_s0 + $0x8] sm:$0xff] }
   0x2   :  { %19 = vperm.xlu0 %39, %v16_v1   ;;  %v24_v2 = vld [vmem:[%s80_s2] sm:$0xff] }
   0x3   :  { %v14_v4 = vld [vmem:[%s81_s0] sm:$0xff] }
   0x6   :  { %27 = vperm.xlu0 %39, %v24_v2  }
  0x7d   :  { %v20_v3 = vpop.permute.xlu0 %19 }
  0x7e   :  { %v22_v6 = vmul.f32 %v20_v3, %v14_v4  ;;  %v23_v7 = vmul.f32 %v20_v3, %v15_v5 }
  0x81   :  { %v28_v8 = vpop.permute.xlu0 %27 }
  0x82   :  { %v30_v9 = vadd.f32 %v28_v8, %v22_v6  ;;  %v31_v10 = vadd.f32 %v28_v8, %v23_v7 }
  0x84   :  { %32 = vst [vmem:[%s82_s3] sm:$0xff] %v30_v9  ;;  %33 = vst [vmem:[%s82_s3 + $0x8] sm:$0xff] %v31_v10 }

</bundles_post_ra>
